<compile_context>
chip_gen: v7x
topology: tpu7x:2x2x1
jax: 0.10.0
libtpu: 0.0.40
codegen_flags: <defaults>
</compile_context>

<pallas_src>
import functools
import math

import jax
import jax.numpy as jnp
from jax.experimental import pallas as pl
from jax.experimental.pallas import tpu as pltpu


def _round_up(n, m):
    return ((n + m - 1) // m) * m


def _default_tail_dtype():
    """bf16 elementwise tail on v6e/v7x (bf16 VALU/EUP); f32 on v5e and older."""
    try:
        kind = jax.devices()[0].device_kind.lower()
    except Exception:
        return jnp.bfloat16
    if any(v in kind for v in ("v2", "v3", "v4", "v5")):
        return jnp.float32
    return jnp.bfloat16


_SINCOS_OK = None


def sincos_in_kernel_ok():
    """One-time probe: do jnp.sin / jnp.cos lower (and compute sanely) in-kernel?"""
    global _SINCOS_OK
    if _SINCOS_OK is None:
        def probe(x_ref, o_ref):
            o_ref[...] = jnp.sin(x_ref[...]) + jnp.cos(x_ref[...])
        try:
            x = jnp.linspace(0.0, 2000.0, 8 * 128, dtype=jnp.float32).reshape(8, 128)
            y = pl.pallas_call(
                probe, out_shape=jax.ShapeDtypeStruct((8, 128), jnp.float32))(x)
            jax.block_until_ready(y)
            _SINCOS_OK = bool(jnp.allclose(y, jnp.sin(x) + jnp.cos(x), atol=1e-2))
        except Exception:
            _SINCOS_OK = False
    return _SINCOS_OK


def _mlp_tail(cos_a, sin_a, feat, va_ref, b1_ref, w1_ref, w2_ref, b2_ref,
              out_ref, tail_dtype):
    """Shared fc1 (+folded angle_proj) -> SiLU -> fc2 for one token tile."""
    # fc1 over the merged [sin | cos] features: ONE MXU dot, K = dim/2,
    # f32 accumulation.
    h32 = jnp.dot(feat, w1_ref[...], preferred_element_type=jnp.float32)
    # angle_proj folded into fc1 (va = Wa @ W1_angle) + b1 stay on the VPU so the
    # MXU K dim stays exactly dim/2.  Post-matmul chain is one fused expression
    # in tail_dtype (bf16 on v6e/v7x, f32 on v5e) to minimise passes over h.
    va = va_ref[...]
    h = (h32.astype(tail_dtype) + b1_ref[...]
         + cos_a * va[0:1, :] + sin_a * va[1:2, :])          # (bn, hidden)
    h = h * jax.nn.sigmoid(h)                                # SiLU (EUP sigmoid)
    y = jnp.dot(h.astype(w2_ref.dtype), w2_ref[...],
                preferred_element_type=jnp.float32) + b2_ref[...]
    out_ref[...] = y.astype(out_ref.dtype)


def _mouse_fused_kernel(x_ref, inv_ref, va_ref, b1_ref, w1_ref, w2_ref, b2_ref,
                        out_ref, *, mult, tail_dtype, compute_dtype):
    """Feature engineering + MLP fully in-kernel: reads only raw (bn, 2) deltas."""
    x = x_ref[...].astype(jnp.float32)                       # (bn, 2)
    t = jnp.log(1.0 + jnp.abs(x))                            # log1p(|x|)
    t = jnp.where(x < 0.0, -t, t)                            # sign(x) * log1p(|x|)
    t0, t1 = t[:, 0:1], t[:, 1:2]
    r = jnp.sqrt(t0 * t0 + t1 * t1)                          # (bn, 1) magnitude
    safe = jnp.where(r > 0.0, r, 1.0)
    # cos/sin of atan2(t1, t0) without atan2; atan2(0, 0) = 0 -> (1, 0)
    cos_a = jnp.where(r > 0.0, t0 / safe, 1.0).astype(tail_dtype)
    sin_a = jnp.where(r > 0.0, t1 / safe, 0.0).astype(tail_dtype)
    phase = (r * mult) * inv_ref[...]                        # (bn, half)
    feat = jnp.concatenate([jnp.sin(phase), jnp.cos(phase)],
                           axis=-1).astype(compute_dtype)    # (bn, dim/2)
    _mlp_tail(cos_a, sin_a, feat, va_ref, b1_ref, w1_ref, w2_ref, b2_ref,
              out_ref, tail_dtype)


def _mouse_prefeat_kernel(ang_ref, feat_ref, va_ref, b1_ref, w1_ref, w2_ref,
                          b2_ref, out_ref, *, tail_dtype):
    """Fallback: features precomputed in the wrapper (one HBM round trip)."""
    ang = ang_ref[...].astype(tail_dtype)                    # (bn, 2): [cos_a, sin_a]
    _mlp_tail(ang[:, 0:1], ang[:, 1:2], feat_ref[...], va_ref, b1_ref, w1_ref,
              w2_ref, b2_ref, out_ref, tail_dtype)


def mouse_embedding(x, wa, w1, b1, w2, b2, *, theta=300.0, mult=1000.0,
                    block_n=1024, compute_dtype=jnp.bfloat16, tail_dtype=None,
                    out_dtype=jnp.bfloat16, fuse_features=None):
    """MouseEmbedding forward.

    x  : (..., 2) float mouse deltas
    wa : (2, dim//2)      angle_proj weight, pre-transposed (in, out), no bias
    w1 : (dim, 4*dim)     MLP fc1 weight, pre-transposed (in, out)
    b1 : (4*dim,)         fc1 bias
    w2 : (4*dim, dim_out) MLP fc2 weight, pre-transposed (in, out)
    b2 : (dim_out,)       fc2 bias
    MLPCustom is taken as fc1 -> SiLU -> fc2.
    """
    if tail_dtype is None:
        tail_dtype = _default_tail_dtype()
    if fuse_features is None:
        fuse_features = sincos_in_kernel_ok()

    dim_half = wa.shape[1]
    dim = 2 * dim_half
    half = dim // 4                       # SinCosEmbed half_dim for a dim//2 embedding
    hidden = w1.shape[1]
    dim_out = w2.shape[1]
    assert w1.shape[0] == dim and w2.shape[0] == hidden and half >= 2

    lead = x.shape[:-1]
    n = 1
    for s in lead:
        n *= s
    xf = x.reshape(n, 2).astype(jnp.float32)

    # ---- fold angle_proj into fc1; merge the sin|cos rows of fc1 into one weight ----
    w1f = w1.astype(jnp.float32)
    va = (wa.astype(jnp.float32) @ w1f[:dim_half]).astype(tail_dtype)   # (2, hidden)
    w1sc = w1f[dim_half:].astype(compute_dtype)                         # (dim/2, hidden)
    w2c = w2.astype(compute_dtype)
    b1_2d = b1.reshape(1, hidden).astype(tail_dtype)
    b2_2d = b2.reshape(1, dim_out).astype(jnp.float32)
    inv_freq = jnp.exp(jnp.arange(half, dtype=jnp.float32)
                       * (-math.log(theta) / (half - 1))).reshape(1, half)

    # ---- token tiling: big tiles for large N, >=2 blocks for moderate N (v7x
    #      has 2 TCs), single 16-row-multiple block for tiny N ----
    if n >= 256:
        bn = min(block_n, _round_up(pl.cdiv(n, 2), 128))
    else:
        bn = _round_up(max(n, 1), 16)
    n_blocks = pl.cdiv(n, bn)
    n_pad = n_blocks * bn

    tok = lambda i: (i, 0)      # token-tiled blocks
    rep = lambda i: (0, 0)      # VMEM-resident (same block every grid step)
    weight_specs = [
        pl.BlockSpec((2, hidden), rep),         # folded angle_proj @ fc1 rows
        pl.BlockSpec((1, hidden), rep),         # fc1 bias
        pl.BlockSpec((dim_half, hidden), rep),  # fc1 rows for merged [sin | cos]
        pl.BlockSpec((hidden, dim_out), rep),   # fc2 weight
        pl.BlockSpec((1, dim_out), rep),        # fc2 bias
    ]
    cparams = pltpu.CompilerParams(
        dimension_semantics=("parallel",),          # shard token axis across v7x TCs
        vmem_limit_bytes=48 * 1024 * 1024,          # explicit (v5e default is 16 MiB),
    )                                               # stays under v7x's 64 MiB/TC

    if fuse_features:
        if n_pad != n:
            xf = jnp.pad(xf, ((0, n_pad - n), (0, 0)))
        kernel = functools.partial(_mouse_fused_kernel, mult=float(mult),
                                   tail_dtype=tail_dtype, compute_dtype=compute_dtype)
        out = pl.pallas_call(
            kernel,
            out_shape=jax.ShapeDtypeStruct((n_pad, dim_out), out_dtype),
            grid=(n_blocks,),
            in_specs=[pl.BlockSpec((bn, 2), tok),          # raw mouse deltas
                      pl.BlockSpec((1, half), rep)] + weight_specs,
            out_specs=pl.BlockSpec((bn, dim_out), tok),
            compiler_params=cparams,
        )(xf, inv_freq, va, b1_2d, w1sc, w2c, b2_2d)
    else:
        # TODO(synk): fallback only — jnp.sin/jnp.cos did not lower on this Mosaic
        # build, so SinCos features take one bf16 HBM round trip through the wrapper.
        t = jnp.sign(xf) * jnp.log1p(jnp.abs(xf))
        r = jnp.sqrt(jnp.sum(t * t, axis=-1, keepdims=True))
        safe = jnp.where(r > 0, r, 1.0)
        cos_a = jnp.where(r > 0, t[:, 0:1] / safe, 1.0)
        sin_a = jnp.where(r > 0, t[:, 1:2] / safe, 0.0)
        ang = jnp.concatenate([cos_a, sin_a], axis=-1)                 # (n, 2)
        phase = (r * mult) * inv_freq                                  # (n, half)
        feat = jnp.concatenate([jnp.sin(phase), jnp.cos(phase)],
                               axis=-1).astype(compute_dtype)          # (n, dim/2)
        if n_pad != n:
            ang = jnp.pad(ang, ((0, n_pad - n), (0, 0)))
            feat = jnp.pad(feat, ((0, n_pad - n), (0, 0)))
        kernel = functools.partial(_mouse_prefeat_kernel, tail_dtype=tail_dtype)
        out = pl.pallas_call(
            kernel,
            out_shape=jax.ShapeDtypeStruct((n_pad, dim_out), out_dtype),
            grid=(n_blocks,),
            in_specs=[pl.BlockSpec((bn, 2), tok),
                      pl.BlockSpec((bn, dim_half), tok)] + weight_specs,
            out_specs=pl.BlockSpec((bn, dim_out), tok),
            compiler_params=cparams,
        )(ang, feat, va, b1_2d, w1sc, w2c, b2_2d)

    return out[:n].reshape(*lead, dim_out)


def mouse_embedding_reference(x, wa, w1, b1, w2, b2, theta=300.0, mult=1000.0):
    """Literal f32 port of the PyTorch forward (for correctness checking)."""
    x = x.astype(jnp.float32)
    t = jnp.sign(x) * jnp.log1p(jnp.abs(x))
    angles = jnp.arctan2(t[..., 1], t[..., 0])
    mags = jnp.linalg.norm(t, axis=-1)
    angle_emb = jnp.stack([jnp.cos(angles), jnp.sin(angles)], axis=-1)     # (..., 2)
    half = wa.shape[1] // 2
    freqs = jnp.exp(jnp.arange(half, dtype=jnp.float32)
                    * (-math.log(theta) / (half - 1)))
    m = (mags * mult)[..., None] * freqs
    mag_emb = jnp.concatenate([jnp.sin(m), jnp.cos(m)], axis=-1)           # (..., dim//2)
    feat = jnp.concatenate([angle_emb @ wa, mag_emb], axis=-1)             # (..., dim)
    h = feat @ w1 + b1
    h = h * jax.nn.sigmoid(h)
    return h @ w2 + b2


if __name__ == "__main__":
    key = jax.random.PRNGKey(0)
    B, S = 2, 8             # batch of 2, 8 mouse samples each
    dim = 64                # module width (PyTorch default is 512; small here)
    hidden = dim * 4
    dim_out = 128           # lane-dense output width (multiple of 128)

    k0, k1, k2, k3, k4, k5 = jax.random.split(key, 6)
    x = 2.0 * jax.random.normal(k0, (B, S, 2), jnp.float32)                 # (dx, dy)
    wa = jax.random.normal(k1, (2, dim // 2), jnp.float32) / math.sqrt(2.0)
    w1 = jax.random.normal(k2, (dim, hidden), jnp.float32) / math.sqrt(dim)
    b1 = 0.02 * jax.random.normal(k3, (hidden,), jnp.float32)
    w2 = jax.random.normal(k4, (hidden, dim_out), jnp.float32) / math.sqrt(hidden)
    b2 = 0.02 * jax.random.normal(k5, (dim_out,), jnp.float32)

    # Probe sin/cos lowering once, outside jit, so the path choice is static.
    fuse = sincos_in_kernel_ok()
    fwd = jax.jit(functools.partial(mouse_embedding, fuse_features=fuse))
    out = jax.block_until_ready(fwd(x, wa, w1, b1, w2, b2))

    ref = jax.block_until_ready(mouse_embedding_reference(x, wa, w1, b1, w2, b2))

    assert out.shape == (B, S, dim_out), out.shape
    out_f32 = out.astype(jnp.float32)
    max_err = float(jnp.max(jnp.abs(out_f32 - ref)))
    # bf16 MXU operands + bf16 tail/output (f32 dot accumulation) vs f32 reference.
    assert jnp.allclose(out_f32, ref, atol=8e-2, rtol=8e-2), \
        f"mismatch, max|err|={max_err}"
    print("KERNEL_OK")
</pallas_src>

<mosaic_0001>
module attributes {stable_mosaic.version = 11 : i64} {
  func.func @probe(%arg0: memref<8x128xf32, #tpu.memory_space<vmem>>, %arg1: memref<8x128xf32, #tpu.memory_space<vmem>>) attributes {dimension_semantics = [], scalar_prefetch = 0 : i64, scratch_operands = 0 : i64, tpu.core_type = #tpu.core_type<tc>} {
    %c0 = arith.constant 0 : index
    %c0_0 = arith.constant 0 : index
    %0 = vector.load %arg0[%c0, %c0_0] : memref<8x128xf32, #tpu.memory_space<vmem>>, vector<8x128xf32>
    %1 = math.sin %0 : vector<8x128xf32>
    %c0_1 = arith.constant 0 : index
    %c0_2 = arith.constant 0 : index
    %2 = vector.load %arg0[%c0_1, %c0_2] : memref<8x128xf32, #tpu.memory_space<vmem>>, vector<8x128xf32>
    %3 = math.cos %2 : vector<8x128xf32>
    %4 = arith.addf %1, %3 : vector<8x128xf32>
    %c0_3 = arith.constant 0 : index
    %c0_4 = arith.constant 0 : index
    %5 = vector.load %arg1[%c0_3, %c0_4] : memref<8x128xf32, #tpu.memory_space<vmem>>, vector<8x128xf32>
    tpu.vector_store %arg1[%c0_3, %c0_4], %4 {strides = array<i32>} : memref<8x128xf32, #tpu.memory_space<vmem>>, vector<8x128xf32>,
    return
  }
}

module attributes {stable_mosaic.version = 11 : i64} {
  func.func @_mouse_prefeat_kernel(%arg0: i32, %arg1: memref<16x2xf32, #tpu.memory_space<vmem>>, %arg2: memref<16x32xbf16, #tpu.memory_space<vmem>>, %arg3: memref<2x256xbf16, #tpu.memory_space<vmem>>, %arg4: memref<1x256xbf16, #tpu.memory_space<vmem>>, %arg5: memref<32x256xbf16, #tpu.memory_space<vmem>>, %arg6: memref<256x128xbf16, #tpu.memory_space<vmem>>, %arg7: memref<1x128xf32, #tpu.memory_space<vmem>>, %arg8: memref<16x128xbf16, #tpu.memory_space<vmem>>) attributes {dimension_semantics = [#tpu.dimension_semantics<parallel>], iteration_bounds = array<i64: 1>, scalar_prefetch = 0 : i64, scratch_operands = 0 : i64, tpu.core_type = #tpu.core_type<tc>, window_params = [{transform_indices = @transform_0, window_bounds = array<i64: 16, 2>}, {transform_indices = @transform_1, window_bounds = array<i64: 16, 32>}, {pipeline_mode = #tpu.pipeline_mode<synchronous>, transform_indices = @transform_2, window_bounds = array<i64: 2, 256>}, {pipeline_mode = #tpu.pipeline_mode<synchronous>, transform_indices = @transform_3, window_bounds = array<i64: 1, 256>}, {pipeline_mode = #tpu.pipeline_mode<synchronous>, transform_indices = @transform_4, window_bounds = array<i64: 32, 256>}, {pipeline_mode = #tpu.pipeline_mode<synchronous>, transform_indices = @transform_5, window_bounds = array<i64: 256, 128>}, {pipeline_mode = #tpu.pipeline_mode<synchronous>, transform_indices = @transform_6, window_bounds = array<i64: 1, 128>}, {transform_indices = @transform_7, window_bounds = array<i64: 16, 128>}]} {
    %c0 = arith.constant 0 : index
    %c0_0 = arith.constant 0 : index
    %0 = vector.load %arg1[%c0, %c0_0] : memref<16x2xf32, #tpu.memory_space<vmem>>, vector<16x2xf32>
    %1 = arith.truncf %0 : vector<16x2xf32> to vector<16x2xbf16>
    %2 = vector.extract_strided_slice %1 {offsets = [0, 0], sizes = [16, 1], strides = [1, 1]} : vector<16x2xbf16> to vector<16x1xbf16>
    %3 = vector.extract_strided_slice %1 {offsets = [0, 1], sizes = [16, 1], strides = [1, 1]} : vector<16x2xbf16> to vector<16x1xbf16>
    %c0_1 = arith.constant 0 : index
    %c0_2 = arith.constant 0 : index
    %4 = vector.load %arg2[%c0_1, %c0_2] : memref<16x32xbf16, #tpu.memory_space<vmem>>, vector<16x32xbf16>
    %c0_3 = arith.constant 0 : index
    %c0_4 = arith.constant 0 : index
    %5 = vector.load %arg5[%c0_3, %c0_4] : memref<32x256xbf16, #tpu.memory_space<vmem>>, vector<32x256xbf16>
    %cst = arith.constant dense<0.000000e+00> : vector<16x256xf32>
    %6 = tpu.matmul %4, %5, %cst {dimension_numbers = #tpu.dot_dimension_numbers<[1], [0], [0], [1], [0, 0, 1, 1], [], []>} : vector<16x32xbf16>, vector<32x256xbf16>, vector<16x256xf32> -> vector<16x256xf32>
    %c0_5 = arith.constant 0 : index
    %c0_6 = arith.constant 0 : index
    %7 = vector.load %arg3[%c0_5, %c0_6] : memref<2x256xbf16, #tpu.memory_space<vmem>>, vector<2x256xbf16>
    %8 = arith.truncf %6 : vector<16x256xf32> to vector<16x256xbf16>
    %c0_7 = arith.constant 0 : index
    %c0_8 = arith.constant 0 : index
    %9 = vector.load %arg4[%c0_7, %c0_8] : memref<1x256xbf16, #tpu.memory_space<vmem>>, vector<1x256xbf16>
    %10 = vector.broadcast %9 : vector<1x256xbf16> to vector<16x256xbf16>
    %11 = arith.addf %8, %10 : vector<16x256xbf16>
    %12 = vector.extract_strided_slice %7 {offsets = [0, 0], sizes = [1, 256], strides = [1, 1]} : vector<2x256xbf16> to vector<1x256xbf16>
    %13 = vector.broadcast %2 : vector<16x1xbf16> to vector<16x256xbf16>
    %14 = vector.broadcast %12 : vector<1x256xbf16> to vector<16x256xbf16>
    %15 = arith.mulf %13, %14 : vector<16x256xbf16>
    %16 = arith.addf %11, %15 : vector<16x256xbf16>
    %17 = vector.extract_strided_slice %7 {offsets = [1, 0], sizes = [1, 256], strides = [1, 1]} : vector<2x256xbf16> to vector<1x256xbf16>
    %18 = vector.broadcast %3 : vector<16x1xbf16> to vector<16x256xbf16>
    %19 = vector.broadcast %17 : vector<1x256xbf16> to vector<16x256xbf16>
    %20 = arith.mulf %18, %19 : vector<16x256xbf16>
    %21 = arith.addf %16, %20 : vector<16x256xbf16>
    %22 = arith.negf %21 : vector<16x256xbf16>
    %23 = math.exp %22 : vector<16x256xbf16>
    %cst_9 = arith.constant 1.000000e+00 : bf16
    %24 = vector.broadcast %cst_9 : bf16 to vector<16x256xbf16>
    %25 = arith.addf %24, %23 : vector<16x256xbf16>
    %26 = arith.divf %24, %25 : vector<16x256xbf16>
    %27 = arith.mulf %21, %26 : vector<16x256xbf16>
    %c0_10 = arith.constant 0 : index
    %c0_11 = arith.constant 0 : index
    %28 = vector.load %arg6[%c0_10, %c0_11] : memref<256x128xbf16, #tpu.memory_space<vmem>>, vector<256x128xbf16>
    %cst_12 = arith.constant dense<0.000000e+00> : vector<16x128xf32>
    %29 = tpu.matmul %27, %28, %cst_12 {dimension_numbers = #tpu.dot_dimension_numbers<[1], [0], [0], [1], [0, 0, 1, 1], [], []>} : vector<16x256xbf16>, vector<256x128xbf16>, vector<16x128xf32> -> vector<16x128xf32>
    %c0_13 = arith.constant 0 : index
    %c0_14 = arith.constant 0 : index
    %30 = vector.load %arg7[%c0_13, %c0_14] : memref<1x128xf32, #tpu.memory_space<vmem>>, vector<1x128xf32>
    %31 = vector.broadcast %30 : vector<1x128xf32> to vector<16x128xf32>
    %32 = arith.addf %29, %31 : vector<16x128xf32>
    %33 = arith.truncf %32 : vector<16x128xf32> to vector<16x128xbf16>
    %c0_15 = arith.constant 0 : index
    %c0_16 = arith.constant 0 : index
    %34 = vector.load %arg8[%c0_15, %c0_16] : memref<16x128xbf16, #tpu.memory_space<vmem>>, vector<16x128xbf16>
    tpu.vector_store %arg8[%c0_15, %c0_16], %33 {strides = array<i32>} : memref<16x128xbf16, #tpu.memory_space<vmem>>, vector<16x128xbf16>,
    return
  }
  func.func @transform_0(%arg0: i32) -> (i32, i32) {
    %c0_i32 = arith.constant 0 : i32
    %c0_i32_0 = arith.constant 0 : i32
    return %arg0, %c0_i32 : i32, i32
  }
  func.func @transform_1(%arg0: i32) -> (i32, i32) {
    %c0_i32 = arith.constant 0 : i32
    %c0_i32_0 = arith.constant 0 : i32
    return %arg0, %c0_i32 : i32, i32
  }
  func.func @transform_2(%arg0: i32) -> (i32, i32) {
    %c0_i32 = arith.constant 0 : i32
    %c0_i32_0 = arith.constant 0 : i32
    %c0_i32_1 = arith.constant 0 : i32
    return %c0_i32, %c0_i32_0 : i32, i32
  }
  func.func @transform_3(%arg0: i32) -> (i32, i32) {
    %c0_i32 = arith.constant 0 : i32
    %c0_i32_0 = arith.constant 0 : i32
    %c0_i32_1 = arith.constant 0 : i32
    return %c0_i32, %c0_i32_0 : i32, i32
  }
  func.func @transform_4(%arg0: i32) -> (i32, i32) {
    %c0_i32 = arith.constant 0 : i32
    %c0_i32_0 = arith.constant 0 : i32
    %c0_i32_1 = arith.constant 0 : i32
    return %c0_i32, %c0_i32_0 : i32, i32
  }
  func.func @transform_5(%arg0: i32) -> (i32, i32) {
    %c0_i32 = arith.constant 0 : i32
    %c0_i32_0 = arith.constant 0 : i32
    %c0_i32_1 = arith.constant 0 : i32
    return %c0_i32, %c0_i32_0 : i32, i32
  }
  func.func @transform_6(%arg0: i32) -> (i32, i32) {
    %c0_i32 = arith.constant 0 : i32
    %c0_i32_0 = arith.constant 0 : i32
    %c0_i32_1 = arith.constant 0 : i32
    return %c0_i32, %c0_i32_0 : i32, i32
  }
  func.func @transform_7(%arg0: i32) -> (i32, i32) {
    %c0_i32 = arith.constant 0 : i32
    %c0_i32_0 = arith.constant 0 : i32
    return %arg0, %c0_i32 : i32, i32
  }
}

</mosaic_0001>

<bundles_post_ra>
// kernel: tpu_custom_call.1
= control target key start
LH: loop header
LB: loop body
LE: loop exit
PB: predicated region body
PF: predicated region fallthrough
CT: control target
= control target key end

     0   :  { %6 = vsyncpa [#allocation3], 0  ;;  %s381_s0 = inlined_call_operand.hbm [shape: f32[8,128], index: 0, kind: input, shape index: {}]   ;;  %s382_s1 = inlined_call_operand.hbm [shape: f32[8,128], index: 1, kind: output, shape index: {}]  }
   0x1   :  { %7 = vsyncpa [#allocation4], 0  ;;  %s318_s6 = smov [#allocation2]   ;;  %s270_s10 = scalar_lea.hbm %s381_s0, 128 }
   0x2   :  { %s14_s7 = sshll.u32 %s318_s6, 4  ;;  %p271_p0 = scmp.ne.s32.totalorder %s381_s0, %s270_s10  ;;  %s15_s7 = int_to_ptr.vmem [resolvable:$true] %s14_s7 }
   0x3   :  { %p274_p1 = scmp.lt.u32.totalorder %s270_s10, %s381_s0 }
   0x5   :  { %p276_p2 = pnand %p274_p1, %p271_p0 }
   0x7   :  { %279 = shalt.err (!%p276_p2)
}
   0x8   :  { %s280_s15 = scalar_lea.vmem %s15_s7, 128  ;;  %p285_p4 = scmp.lt.s32.totalorder %s15_s7, %s15_s7 }
   0x9   :  { %p281_p3 = scmp.ne.s32.totalorder %s15_s7, %s280_s15  ;;  %p286_p5 = scmp.lt.s32.totalorder %s280_s15, %s280_s15 }
   0xb   :  { %p287_p6 = por %p286_p5, %p285_p4 }
   0xd   :  { %p288_p7 = pnand %p287_p6, %p281_p3 }
   0xf   :  { %291 = shalt.err (!%p288_p7)
}
  0x10   :  { %17 = dma.hbm_to_vmem [thread:$0]  %s381_s0, 128, %s15_s7, [#allocation3]  }
  0x11   :  { %314 = dma.done.wait [#allocation3], 128  }
  0x12   :  { %315 = vsyncadd [#allocation3], 4294967168  ;;  %v348_v0 = vld [vmem:[#allocation2] sm:$0xff]  ;;  %v319_v12 = vmov 683565275   ;;  %s325_s0 = smov [#allocation5]  }
  0x13   :  { %v25_v1 = vand.u32 2139095040, %v348_v0  ;;  %v22_v3 = vand.u32 2147483647, %v348_v0  ;;  %v320_v14 = vmov 2475754826   ;;  %vm24_vm7 = vcmp.lt.s32.totalorder %v348_v0, 0 }
  0x14   :  { %v321_v16 = vmov 2131351028   ;;  %v322_v18 = vmov 2102212464   ;;  %v323_v20 = vmov 920167782   ;;  %vm114_vm15 = vweird.f32 %v348_v0 }
  0x15   :  { %v26_v2 = vshrl.u32 %v25_v1, 23  ;;  %v29_v6 = vand.u32 8388607, %v22_v3  ;;  %v324_v27 = vmov 1326507024   ;;  %s237_s18 = sshll.u32 %s325_s0, 4  ;;  %s238_s18 = int_to_ptr.vmem [resolvable:$true] %s237_s18 }
  0x16   :  { %vm23_vm8 = vcmp.le.f32.partialorder %v22_v3, 0.7853982  ;;  %s292_s19 = scalar_lea.vmem %s238_s18, 128  ;;  %p297_p9 = scmp.lt.s32.totalorder %s238_s18, %s238_s18 }
  0x17   :  { %v246_v4 = vadd.s32 4294967169, %v26_v2  ;;  %v30_v9 = vor.u32 8388608, %v29_v6  ;;  %p293_p8 = scmp.ne.s32.totalorder %s238_s18, %s292_s19  ;;  %p298_p10 = scmp.lt.s32.totalorder %s292_s19, %s292_s19 }
  0x19   :  { %v32_v5 = vadd.s32 1, %v246_v4  ;;  %v70_v29 = vshll.u32 %v30_v9, 8  ;;  %p299_p11 = por %p298_p10, %p297_p9 }
  0x1b   :  { %vm33_vm0 = vcmp.gt.s32.totalorder %v32_v5, 0  ;;  %p300_p12 = pnand %p299_p11, %p293_p8 }
  0x1c   :  { %v34_v7 = vsel %vm33_vm0, %v32_v5, 0 }
  0x1d   :  { %v36_v8 = vand.u32 31, %v34_v7  ;;  %v35_v10 = vshrl.u32 %v34_v7, 5 }
  0x1f   :  { %v37_v11 = vsub.s32 32, %v36_v8  ;;  %v39_v13 = vshll.u32 %v319_v12, %v36_v8  ;;  %v42_v15 = vshll.u32 %v320_v14, %v36_v8  ;;  %v45_v17 = vshll.u32 %v321_v16, %v36_v8 }
  0x20   :  { %v48_v19 = vshll.u32 %v322_v18, %v36_v8  ;;  %v51_v21 = vshll.u32 %v323_v20, %v36_v8  ;;  %vm54_vm1 = vcmp.lt.s32.totalorder %v35_v10, 1  ;;  %vm57_vm2 = vcmp.lt.s32.totalorder %v35_v10, 4 }
  0x21   :  { %v38_v22 = vshrl.u32 %v319_v12, %v37_v11  ;;  %v40_v23 = vshrl.u32 %v320_v14, %v37_v11  ;;  %v43_v24 = vshrl.u32 %v321_v16, %v37_v11  ;;  %v46_v25 = vshrl.u32 %v322_v18, %v37_v11 }
  0x22   :  { %v49_v26 = vshrl.u32 %v323_v20, %v37_v11  ;;  %v52_v28 = vshrl.u32 %v324_v27, %v37_v11  ;;  %vm55_vm3 = vcmp.lt.s32.totalorder %v35_v10, 2  ;;  %vm56_vm4 = vcmp.lt.s32.totalorder %v35_v10, 3 }
  0x23   :  { %v41_v30 = vor.u32 %v40_v23, %v39_v13  ;;  %v44_v31 = vor.u32 %v43_v24, %v42_v15  ;;  %v47_v32 = vor.u32 %v46_v25, %v45_v17 }
  0x24   :  { %v50_v33 = vor.u32 %v49_v26, %v48_v19  ;;  %v53_v34 = vor.u32 %v52_v28, %v51_v21 }
  0x25   :  { %v58_v35 = vsel %vm54_vm1, %v38_v22, %v41_v30  ;;  %v59_v36 = vsel %vm57_vm2, %v47_v32, 2102212464  ;;  %v62_v37 = vsel %vm54_vm1, %v41_v30, %v44_v31  ;;  %v66_v38 = vsel %vm54_vm1, %v44_v31, %v47_v32 }
  0x26   :  { %v60_v39 = vsel %vm56_vm4, %v44_v31, %v59_v36  ;;  %v63_v40 = vsel %vm57_vm2, %v50_v33, 920167782  ;;  %v67_v41 = vsel %vm57_vm2, %v53_v34, 1326507024 }
  0x27   :  { %v64_v42 = vsel %vm56_vm4, %v47_v32, %v63_v40  ;;  %v68_v43 = vsel %vm56_vm4, %v50_v33, %v67_v41  ;;  %v61_v44 = vsel %vm55_vm3, %v58_v35, %v60_v39 }
  0x28   :  { %v65_v45 = vsel %vm55_vm3, %v62_v37, %v64_v42  ;;  %v69_v46 = vsel %vm55_vm3, %v66_v38, %v68_v43  ;;  %v77_v51 = vmul.u32 %v70_v29, %v61_v44 }
  0x29   :  { %v354_v47 = vmul.u32.u64.low %v70_v29, %v69_v46  ;;  %v355_v48 = vmul.u32.u64.high %v70_v29, %v69_v46, %v354_v47  ;;  %v357_v49 = vmul.u32.u64.low %v70_v29, %v65_v45  ;;  %v358_v50 = vmul.u32.u64.high %v70_v29, %v65_v45, %v357_v49 }
  0x2b   :  { %vm79_vm5 = vc.u32 %v355_v48, %v357_v49  ;;  %v80_v52 = vadd.s32 1, %v358_v50  ;;  %v78_v63 = vadd.s32 %v357_v49, %v355_v48 }
  0x2d   :  { %v81_v53 = vsel %vm79_vm5, %v80_v52, %v358_v50 }
  0x2e   :  { %v82_v54 = vadd.s32 %v81_v53, %v77_v51 }
  0x30   :  { %v83_v55 = vadd.s32 536870912, %v82_v54 }
  0x32   :  { %v84_v56 = vshrl.u32 %v83_v55, 30 }
  0x34   :  { %v85_v57 = vshll.u32 %v84_v56, 30  ;;  %v108_v13 = vsub.s32 4, %v84_v56 }
  0x36   :  { %v86_v58 = vsub.s32 %v82_v54, %v85_v57  ;;  %v109_v16 = vsel %vm24_vm7, %v108_v13, %v84_v56 }
  0x37   :  { %v111_v19 = vsel %vm23_vm8, 0, %v109_v16 }
  0x38   :  { %v88_v59 = vsub.s32 0, %v86_v58  ;;  %v115_v20 = vadd.s32 3, %v111_v19  ;;  %v219_v22 = vand.u32 3, %v111_v19 }
  0x3a   :  { %v247_v60 = vmin.u32 %v88_v59, %v86_v58  ;;  %v116_v21 = vand.u32 3, %v115_v20  ;;  %vm224_vm10 = vcmp.eq.s32.totalorder %v219_v22, 2  ;;  %vm221_vm12 = vcmp.eq.s32.totalorder %v219_v22, 0 }
  0x3b   :  { %vm220_vm14 = vcmp.lt.s32.totalorder %v219_v22, 2 }
  0x3c   :  { %v90_v61 = vclz %v247_v60  ;;  %vm121_vm9 = vcmp.eq.s32.totalorder %v116_v21, 2  ;;  %vm118_vm11 = vcmp.eq.s32.totalorder %v116_v21, 0  ;;  %vm117_vm13 = vcmp.lt.s32.totalorder %v116_v21, 2 }
  0x3e   :  { %v248_v62 = vadd.s32 4294967294, %v90_v61 }
  0x40   :  { %vm249_vm6 = vcmp.lt.s32.totalorder %v248_v62, 0 }
  0x41   :  { %v93_v1 = vsel %vm249_vm6, 0, %v248_v62 }
  0x42   :  { %v94_v2 = vsub.s32 32, %v93_v1  ;;  %v95_v4 = vshll.u32 %v86_v58, %v93_v1  ;;  %v98_v5 = vsub.s32 4294967266, %v93_v1 }
  0x44   :  { %v96_v6 = vshrl.u32 %v78_v63, %v94_v2  ;;  %v99_v7 = vadd.s32 127, %v98_v5 }
  0x46   :  { %v97_v8 = vor.u32 %v96_v6, %v95_v4  ;;  %v100_v9 = vshll.u32 %v99_v7, 23 }
  0x48   :  { %v101_v10 = vor.u32 4788187, %v100_v9  ;;  %v104_v11 = vcvt.s32.f32 %v97_v8 }
  0x4a   :  { %v102_v12 = vand.u32 2147483647, %v101_v10 }
  0x4c   :  { %v105_v14 = vmul.f32 %v104_v11, %v102_v12 }
  0x4e   :  { %v106_v15 = vxor.u32 2147483648, %v105_v14 }
  0x50   :  { %v107_v17 = vsel %vm24_vm7, %v106_v15, %v105_v14 }
  0x51   :  { %v110_v18 = vsel %vm23_vm8, %v348_v0, %v107_v17 }
  0x52   :  { %266 = vcosq.f32 %v110_v18 }
  0x53   :  { %268 = vsinq.f32 %v110_v18 }
  0x5c   :  { %v267_v23 = vpop.eup %266 }
  0x5d   :  { %v269_v24 = vpop.eup %268  ;;  %v122_v25 = vxor.u32 2147483648, %v267_v23 }
  0x5e   :  { %v119_v3 = vxor.u32 2147483648, %v269_v24 }
  0x5f   :  { %v123_v26 = vsel %vm121_vm9, %v122_v25, %v269_v24  ;;  %v226_v27 = vsel %vm224_vm10, %v122_v25, %v269_v24 }
  0x60   :  { %v120_v28 = vsel %vm118_vm11, %v267_v23, %v119_v3  ;;  %v223_v29 = vsel %vm221_vm12, %v267_v23, %v119_v3 }
  0x61   :  { %v124_v30 = vsel %vm117_vm13, %v120_v28, %v123_v26  ;;  %v227_v31 = vsel %vm220_vm14, %v223_v29, %v226_v27 }
  0x62   :  { %v125_v32 = vsel %vm114_vm15, nan, %v124_v30  ;;  %v228_v33 = vsel %vm114_vm15, nan, %v227_v31 }
  0x63   :  { %v229_v34 = vadd.f32 %v228_v33, %v125_v32 }
  0x65   :  { %230 = vst [vmem:[#allocation5] sm:$0xff] %v229_v34 }
  0x66   :  { %303 = shalt.err (!%p300_p12)
}
  0x67   :  { %s304_s22 = scalar_lea.hbm %s382_s1, 128 }
  0x68   :  { %p305_p13 = scmp.ne.s32.totalorder %s382_s1, %s304_s22  ;;  %p308_p0 = scmp.lt.u32.totalorder %s304_s22, %s382_s1 }
  0x6a   :  { %p310_p1 = pnand %p308_p0, %p305_p13 }
  0x6c   :  { %313 = shalt.err (!%p310_p1)
}
  0x6d   :  { %240 = dma.vmem_to_hbm [thread:$0]  %s238_s18, 128, %s382_s1, [#allocation4]  }
  0x6e   :  { %316 = dma.done.wait [#allocation4], 128  }
  0x6f   :  { %317 = vsyncadd [#allocation4], 4294967168 }
  0x70   :  { %244 = vsyncpa [#allocation3], 1 }
  0x71   :  { %245 = vsyncpa [#allocation4], 1 }

// kernel: mouse_embedding.1
= control target key start
LH: loop header
LB: loop body
LE: loop exit
PB: predicated region body
PF: predicated region fallthrough
CT: control target
= control target key end

     0   :  { %v560_v2 = vmov 0   ;;  %vm63_vm0 = vcmask 261120   ;;  %v561_v9 = vmov 1   ;;  %s696_s0 = inlined_call_operand.vmem [shape: f32[16,2], index: 0, kind: input, shape index: {}]   ;;  %s697_s1 = inlined_call_operand.vmem [shape: bf16[16,32], index: 1, kind: input, shape index: {}]   ;;  %s698_s2 = inlined_call_operand.vmem [shape: bf16[2,256], index: 2, kind: input, shape index: {}]   ;;  %s699_s3 = inlined_call_operand.vmem [shape: bf16[1,256], index: 3, kind: input, shape index: {}]   ;;  %s700_s4 = inlined_call_operand.vmem [shape: bf16[32,256], index: 4, kind: input, shape index: {}]   ;;  %s701_s5 = inlined_call_operand.vmem [shape: bf16[256,128], index: 5, kind: input, shape index: {}]   ;;  %s702_s6 = inlined_call_operand.vmem [shape: f32[1,128], index: 6, kind: input, shape index: {}]   ;;  %s703_s7 = inlined_call_operand.hbm [shape: bf16[16,128], index: 7, kind: output, shape index: {}]  }
   0x1   :  { %v505_v0 = vld [vmem:[%s700_s4 + $0x4] ss:$8 sps:$4 sm:$0xff]   ;;  %v507_v1 = vld [vmem:[%s700_s4] ss:$8 sps:$4 sm:$0xff]   ;;  %99 = vmatprep.mubr.bf16.mxu0 %v560_v2  ;;  %503 = vset.pattern.permute.xlu0 %v560_v2  ;;  %v508_v3 = vld [vmem:[%s700_s4 + $0x14] ss:$8 sps:$4 sm:$0xff]  }
   0x2   :  { %67 = vmatprep.subr.bf16.mxu0 %v505_v0  ;;  %v510_v4 = vld [vmem:[%s700_s4 + $0x10] ss:$8 sps:$4 sm:$0xff]   ;;  %v29_v5 = vld [vmem:[%s696_s0] sm:$0xff]  ;;  %v30_v7 = vld [vmem:[%s696_s0 + $0x8] sm:$0xff] }
   0x3   :  { %68 = vmatpush1.bf16.msra.mxu0 %v507_v1  ;;  %v511_v6 = vld [vmem:[%s697_s1] sm:$0xff]   ;;  %v31_v8 = vpack.c.bf16 %v30_v7, %v29_v5 }
   0x4   :  { %69 = vmatprep.subr.bf16.mxu0 %v508_v3 }
   0x5   :  { %155 = vperm.xlu0 %503, %v31_v8  }
   0x7   :  { %70 = vmatpush1.bf16.msra.mxu0 %v510_v4 }
   0x9   :  { %504 = vset.pattern.permute.xlu0 %v561_v9 }
   0xa   :  { %444 = vmatmul.mubr.msk.bf16.vlgmr.msra.gmra.mrb[0].mxu0 %vm63_vm0, %v511_v6  ;;  %200 = vperm.xlu0 %504, %v31_v8  }
   0xb   :  { %12 = vsyncpa [#allocation3], 0  ;;  %v512_v10 = vld [vmem:[%s701_s5 + $0x40] sm:$0xff]   ;;  %v514_v12 = vld [vmem:[%s701_s5 + $0x48] sm:$0xff]   ;;  %v562_v26 = vmov 1966171168   ;;  %v126_v28 = vlaneseq }
   0xc   :  { %v513_v11 = vld [vmem:[%s701_s5] sm:$0xff]   ;;  %475 = vmatprep.subr.bf16.mxu1 %v512_v10  ;;  %v515_v13 = vld [vmem:[%s701_s5 + $0x8] sm:$0xff]   ;;  %v516_v14 = vld [vmem:[%s701_s5 + $0x50] sm:$0xff]   ;;  %v124_v27 = vunpack.c.l.s4 %v562_v26 }
   0xd   :  { %476 = vmatpush3.bf16.msra.mxu1 %v513_v11  ;;  %v517_v15 = vld [vmem:[%s701_s5 + $0x10] sm:$0xff]   ;;  %v518_v16 = vld [vmem:[%s701_s5 + $0x58] sm:$0xff]   ;;  %v520_v18 = vld [vmem:[%s701_s5 + $0x60] sm:$0xff]   ;;  %v127_v30 = vshrl.u32 %v126_v28, 7 }
   0xe   :  { %477 = vmatprep.subr.bf16.mxu1 %v514_v12  ;;  %v519_v17 = vld [vmem:[%s701_s5 + $0x18] sm:$0xff]   ;;  %v521_v19 = vld [vmem:[%s701_s5 + $0x20] sm:$0xff]   ;;  %v522_v20 = vld [vmem:[%s701_s5 + $0x68] sm:$0xff]   ;;  %v125_v29 = vunpack.c.0.s8 %v124_v27 }
   0xf   :  { %v523_v21 = vld [vmem:[%s701_s5 + $0x28] sm:$0xff]   ;;  %v524_v22 = vld [vmem:[%s701_s5 + $0x70] sm:$0xff]   ;;  %v526_v24 = vld [vmem:[%s701_s5 + $0x78] sm:$0xff]   ;;  %v142_v44 = vsub.s32 0, %v127_v30 }
  0x10   :  { %v525_v23 = vld [vmem:[%s701_s5 + $0x30] sm:$0xff]   ;;  %v527_v25 = vld [vmem:[%s701_s5 + $0x38] sm:$0xff]   ;;  %v446_v31 = vld.sshfl [vmem:[%s698_s2] sm:$0x11 pattern:$0x75316420]  ;;  %v128_v33 = vsub.s32 %v125_v29, %v127_v30 }
  0x11   :  { %478 = vmatpush3.bf16.msra.mxu1 %v515_v13  ;;  %v445_v32 = vld.sshfl [vmem:[%s699_s3] sm:$0x11 pattern:$0x75316420]  ;;  %v166_v34 = vcombine.high %v446_v31, %v446_v31  ;;  %s563_s5 = smov [#allocation2]  }
  0x12   :  { %479 = vmatprep.subr.bf16.mxu1 %v516_v14  ;;  %v122_v35 = vcombine.high %v445_v32, %v445_v32  ;;  %v173_v36 = vrot.slane %v446_v31, %v128_v33  ;;  %v129_v38 = vrot.slane %v445_v32, %v128_v33  ;;  %s428_s22 = sshll.u32 %s563_s5, 4  ;;  %s429_s22 = int_to_ptr.vmem [resolvable:$true] %s428_s22 }
  0x13   :  { %v180_v37 = vrot.slane %v166_v34, %v128_v33  ;;  %s536_s23 = scalar_lea.vmem %s429_s22, 128  ;;  %p541_p1 = scmp.lt.s32.totalorder %s429_s22, %s429_s22 }
  0x14   :  { %v203_v39 = vshrl.u32 %v173_v36, 16  ;;  %v136_v40 = vrot.slane %v122_v35, %v128_v33  ;;  %v138_v43 = vpack.i.b16 %v129_v38, %v129_v38  ;;  %v182_v45 = vpack.i.b16 %v173_v36, %v173_v36  ;;  %p537_p0 = scmp.ne.s32.totalorder %s429_s22, %s536_s23  ;;  %p542_p2 = scmp.lt.s32.totalorder %s536_s23, %s536_s23 }
  0x15   :  { %480 = vmatpush3.bf16.msra.mxu1 %v517_v15  ;;  %v210_v41 = vshrl.u32 %v180_v37, 16  ;;  %v189_v47 = vpack.i.b16 %v180_v37, %v180_v37 }
  0x16   :  { %481 = vmatprep.subr.bf16.mxu1 %v518_v16  ;;  %v204_v46 = vpack.i.b16 %v203_v39, %v203_v39  ;;  %v145_v48 = vpack.i.b16 %v136_v40, %v136_v40  ;;  %v143_v52 = vrot.slane %v138_v43, %v142_v44  ;;  %v187_v53 = vrot.slane %v182_v45, %v142_v44  ;;  %p543_p3 = por %p542_p2, %p541_p1 }
  0x17   :  { %v211_v49 = vpack.i.b16 %v210_v41, %v210_v41  ;;  %v194_v56 = vrot.slane %v189_v47, %v142_v44 }
  0x18   :  { %v209_v54 = vrot.slane %v204_v46, %v142_v44  ;;  %v150_v57 = vrot.slane %v145_v48, %v142_v44  ;;  %p544_p4 = pnand %p543_p3, %p537_p0 }
  0x19   :  { %482 = vmatpush3.bf16.msra.mxu1 %v519_v17  ;;  %v216_v58 = vrot.slane %v211_v49, %v142_v44 }
  0x1a   :  { %483 = vmatprep.subr.bf16.mxu1 %v520_v18 }
  0x1d   :  { %484 = vmatpush3.bf16.msra.mxu1 %v521_v19 }
  0x1e   :  { %485 = vmatprep.subr.bf16.mxu1 %v522_v20 }
  0x21   :  { %486 = vmatpush3.bf16.msra.mxu1 %v523_v21 }
  0x22   :  { %487 = vmatprep.subr.bf16.mxu1 %v524_v22 }
  0x25   :  { %488 = vmatpush3.bf16.msra.mxu1 %v525_v23 }
  0x26   :  { %489 = vmatprep.subr.bf16.mxu1 %v526_v24 }
  0x29   :  { %490 = vmatpush3.bf16.msra.mxu1 %v527_v25  ;;  %v449_v25 = vld [vmem:[%s702_s6] ss:$0 sm:$0xff] }
  0x84   :  { %v156_v42 = vpop.permute.xlu0 %155 }
  0x85   :  { %v195_v0 = vmul.bf16 %v187_v53, %v156_v42  ;;  %v196_v2 = vmul.bf16 %v194_v56, %v156_v42 }
  0x89   :  { %v201_v59 = vpop.permute.xlu0 %200 }
  0x8a   :  { %v217_v1 = vmul.bf16 %v209_v54, %v201_v59  ;;  %v218_v4 = vmul.bf16 %v216_v58, %v201_v59 }
  0xdd   :  { %v101_v50 = vpop.f32.mrb[0].mxu0 }
  0xde   :  { %v103_v51 = vpop.f32.mrb[1].mxu0 }
  0xdf   :  { %v105_v55 = vpop.f32.mrb[2].mxu0 }
  0xe0   :  { %v111_v60 = vpack.c.bf16 %v105_v55, %v101_v50  ;;  %v107_v61 = vpop.f32.mrb[3].mxu0 }
  0xe1   :  { %v112_v62 = vpack.c.bf16 %v107_v61, %v103_v51 }
  0xe2   :  { %v151_v63 = vadd.bf16 %v143_v52, %v111_v60 }
  0xe3   :  { %v152_v3 = vadd.bf16 %v150_v57, %v112_v62 }
  0xe4   :  { %v197_v5 = vadd.bf16 %v195_v0, %v151_v63 }
  0xe5   :  { %v198_v6 = vadd.bf16 %v196_v2, %v152_v3 }
  0xe6   :  { %v219_v7 = vadd.bf16 %v217_v1, %v197_v5 }
  0xe7   :  { %v220_v8 = vadd.bf16 %v218_v4, %v198_v6 }
  0xe8   :  { %v447_v9 = vmul.bf16 3216621497, %v219_v7 }
  0xe9   :  { %v448_v10 = vmul.bf16 3216621497, %v220_v8 }
  0xea   :  { %528 = vpow.bf16 %v447_v9 }
  0xeb   :  { %530 = vpow.bf16 %v448_v10 }
  0xf5   :  { %v529_v11 = vpop.eup %528 }
  0xf6   :  { %v531_v12 = vpop.eup %530  ;;  %v229_v13 = vadd.bf16 1065369472, %v529_v11 }
  0xf7   :  { %v230_v14 = vadd.bf16 1065369472, %v531_v12 }
  0xf8   :  { %532 = vrcp.bf16 %v229_v13 }
  0xf9   :  { %534 = vrcp.bf16 %v230_v14 }
 0x103   :  { %v533_v15 = vpop.eup %532 }
 0x104   :  { %v535_v16 = vpop.eup %534  ;;  %v232_v17 = vmul.bf16 1065369472, %v533_v15 }
 0x105   :  { %v234_v18 = vmul.bf16 1065369472, %v535_v16 }
 0x106   :  { %v235_v20 = vmul.bf16 %v232_v17, %v219_v7 }
 0x107   :  { %v236_v19 = vmul.bf16 %v234_v18, %v220_v8 }
 0x109   :  { %404 = vmatprep.mubr.bf16.mxu1 %v236_v19 }
 0x10a   :  { %405 = vmatmul.mubr.bf16.vlgmr.msra.gmra.mrb[0].mxu1 %v235_v20 }
 0x1dd   :  { %v491_v21 = vpop.f32.mrb[0].mxu1 }
 0x1de   :  { %v492_v22 = vpop.f32.mrb[1].mxu1 }
 0x1df   :  { %v493_v23 = vadd.f32 %v492_v22, %v491_v21  ;;  %v494_v24 = vpop.f32.mrb[2].mxu1 }
 0x1e0   :  { %v495_v26 = vpop.f32.mrb[3].mxu1 }
 0x1e1   :  { %v496_v27 = vadd.f32 %v495_v26, %v494_v24  ;;  %v407_v28 = vadd.f32 %v493_v23, %v449_v25 }
 0x1e3   :  { %v410_v29 = vadd.f32 %v496_v27, %v449_v25 }
 0x1e5   :  { %v473_v30 = vpack.c.bf16 %v410_v29, %v407_v28 }
 0x1e7   :  { %474 = vst [vmem:[#allocation2] sm:$0xff] %v473_v30  }
 0x1e8   :  { %547 = shalt.err (!%p544_p4)
}
 0x1e9   :  { %s548_s6 = scalar_lea.hbm %s703_s7, 128 }
 0x1ea   :  { %p549_p5 = scmp.ne.s32.totalorder %s703_s7, %s548_s6  ;;  %p552_p6 = scmp.lt.u32.totalorder %s548_s6, %s703_s7 }
 0x1ec   :  { %p554_p7 = pnand %p552_p6, %p549_p5 }
 0x1ee   :  { %557 = shalt.err (!%p554_p7)
}
 0x1ef   :  { %s564_s30 = smov 64   ;;  %s565_s8 = smov 4  }
 0x1f0   :  { %434 = dma.vmem_to_hbm [thread:$0]  %s429_s22, 128, %s703_s7, [#allocation3], %s564_s30, %s564_s30, %s565_s8  }
 0x1f1   :  { %558 = dma.done.wait [#allocation3], 128  }
 0x1f2   :  { %559 = vsyncadd [#allocation3], 4294967168 }
 0x1f3   :  { %438 = vsyncpa [#allocation3], 1 }

</bundles_post_ra>
